<compile_context>
chip_gen: v7x
topology: tpu7x:2x2x1
jax: 0.10.0
libtpu: 0.0.40
codegen_flags: <defaults>
</compile_context>

<pallas_src>
import functools

import jax
import jax.numpy as jnp
from jax import lax
from jax.experimental import pallas as pl
from jax.experimental.pallas import tpu as pltpu


# ----------------------------- tiling helpers ------------------------------

_TARGET_BLOCK_BYTES = 4 << 20      # ~4 MiB x-block per grid step
_MAX_LANE_TILE = 8192              # cap on the L (lane) tile
_VMEM_FLOOR = 16 << 20             # never request less scoped VMEM than this
_VMEM_CEIL = 48 << 20              # stay inside v7x's 64 MiB physical VMEM
_EXCITE_PALLAS_CAP = 32 << 20      # above this, do the tiny matmul chain in XLA

_CONTRACT_LAST = (((1,), (1,)), ((), ()))   # dot_general: contract axis 1 of both


def _largest_divisor_tile(total, quantum, max_tile):
    """Largest multiple of `quantum` that divides `total` and is <= max_tile.

    Falls back to `total` itself (a full-extent block dim is always legal)."""
    best = None
    cand = quantum
    limit = min(total, max_tile)
    while cand <= limit:
        if total % cand == 0:
            best = cand
        cand += quantum
    return best if best is not None else total


def _pick_tiles(n_rows, length, itemsize):
    sub_q = max(8, 32 // itemsize)          # 8 (f32), 16 (bf16), 32 (int8)
    t_len = _largest_divisor_tile(length, 128, _MAX_LANE_TILE)
    max_rows = max(sub_q, _TARGET_BLOCK_BYTES // max(1, t_len * itemsize))
    t_rows = _largest_divisor_tile(n_rows, sub_q, max_rows)
    # Megacore (v7x has 2 TCs): keep >= 2 blocks on the "parallel" row axis
    # whenever the row count allows it, otherwise the squeeze pass (whose only
    # other axis is the "arbitrary" reduction) leaves one core idle.
    if n_rows // t_rows < 2 and n_rows >= 2 * sub_q:
        smaller = _largest_divisor_tile(n_rows, sub_q, n_rows // 2)
        if n_rows % smaller == 0 and n_rows // smaller >= 2:
            t_rows = smaller
    return t_rows, t_len


def _vmem_limit(live_bytes):
    """Tile-derived scoped-VMEM request: live blocks + 50% + 4 MiB slack for
    Mosaic internal scratch, floored at 16 MiB (v5e scoped default) and capped
    at 48 MiB (v7x has only 64 MiB physical VMEM)."""
    need = int(live_bytes)
    need = need + need // 2 + (4 << 20)
    return int(max(_VMEM_FLOOR, min(need, _VMEM_CEIL)))


# ------------------------------- kernels -----------------------------------


def _squeeze_kernel(x_ref, mean_ref, acc_ref, *, inv_len):
    """Row mean over L.  Per step: VPU-only adds of 128-lane column chunks into
    a resident (rows, 128) scratch; one cross-lane reduce in the finalize."""
    l = pl.program_id(1)

    @pl.when(l == 0)
    def _():
        acc_ref[...] = jnp.zeros_like(acc_ref)

    t_len = x_ref.shape[1]
    partial = x_ref[:, 0:128].astype(jnp.float32)
    for c in range(1, t_len // 128):
        partial = partial + x_ref[:, c * 128:(c + 1) * 128].astype(jnp.float32)
    acc_ref[...] += partial

    @pl.when(l == pl.num_programs(1) - 1)
    def _():
        mean_ref[...] = jnp.sum(acc_ref[...], axis=-1, keepdims=True) * inv_len


def _excite_kernel(y_ref, w1_ref, w2_ref, s_ref):
    """s = sigmoid(relu(y @ W1^T) @ W2^T) with weights in native (out, in)
    layout; both matmuls contract on axis 1 so no transposes are needed."""
    y = y_ref[...]                                               # (B, C) f32
    w1 = w1_ref[...].astype(jnp.float32)                         # (C//r, C)
    w2 = w2_ref[...].astype(jnp.float32)                         # (C, C//r)
    h = lax.dot_general(y, w1, _CONTRACT_LAST,
                        preferred_element_type=jnp.float32)      # (B, C//r)
    h = jnp.maximum(h, 0.0)
    z = lax.dot_general(h, w2, _CONTRACT_LAST,
                        preferred_element_type=jnp.float32)      # (B, C)
    s_ref[...] = jax.nn.sigmoid(z)


def _scale_kernel(x_ref, s_ref, o_ref):
    """out = x * s (per-row gate); multiply/store in x's dtype."""
    o_ref[...] = x_ref[...] * s_ref[...].astype(x_ref.dtype)


# ------------------------------- wrapper ------------------------------------


def se_layer(x, w1, w2, *, row_tile=None, len_tile=None):
    """Squeeze-and-excitation forward.

    x:  (B, C, L)
    w1: (C//r, C)   -- PyTorch nn.Linear weight layout (out_features, in_features)
    w2: (C, C//r)
    """
    B, C, L = x.shape
    Cr, C_in = w1.shape
    assert C_in == C and w2.shape == (C, Cr)
    R = B * C
    itemsize = jnp.dtype(x.dtype).itemsize

    # Keep stores lane-dense: pad L up to a multiple of 128 when needed (zeros
    # do not perturb the sum; the mean divides by the true L).
    L_work = L if L % 128 == 0 else ((L + 127) // 128) * 128

    x2d = x.reshape(R, L)                      # contiguous reshape: free
    if L_work != L:
        x2d = jnp.pad(x2d, ((0, 0), (0, L_work - L)))

    t_rows, t_len = _pick_tiles(R, L_work, itemsize)
    if row_tile is not None:
        t_rows = row_tile
    if len_tile is not None:
        t_len = len_tile
    assert R % t_rows == 0 and L_work % t_len == 0
    assert t_len % 128 == 0

    n_rows = R // t_rows
    n_len = L_work // t_len
    blk_x = t_rows * t_len * itemsize

    # ---- pass 1: squeeze (row means), L axis is the reduction --------------
    squeeze_vmem = _vmem_limit(2 * blk_x + 2 * t_rows * 4 + t_rows * 128 * 4)
    means = pl.pallas_call(
        functools.partial(_squeeze_kernel, inv_len=1.0 / L),
        out_shape=jax.ShapeDtypeStruct((R, 1), jnp.float32),
        grid_spec=pltpu.PrefetchScalarGridSpec(
            num_scalar_prefetch=0,
            grid=(n_rows, n_len),
            in_specs=[pl.BlockSpec((t_rows, t_len), lambda r, l: (r, l))],
            out_specs=pl.BlockSpec((t_rows, 1), lambda r, l: (r, 0)),
            scratch_shapes=[pltpu.VMEM((t_rows, 128), jnp.float32)],
        ),
        compiler_params=pltpu.CompilerParams(
            dimension_semantics=("parallel", "arbitrary"),
            vmem_limit_bytes=squeeze_vmem),
        cost_estimate=pl.CostEstimate(
            flops=R * L_work, transcendentals=0,
            bytes_accessed=R * L_work * itemsize + R * 4),
    )(x2d)

    # ---- pass 2: excite (tiny whole-batch matmul chain) ---------------------
    y2d = means.reshape(B, C)
    excite_bytes = 4 * (2 * B * C + 2 * C * Cr + B * Cr)
    if excite_bytes > _EXCITE_PALLAS_CAP:
        # TODO(synk): tile the excite matmuls for very large channel counts;
        # until then, hand the tiny chain to XLA so whole-array VMEM blocks
        # never exceed v7x's 64 MiB budget.
        h = jnp.maximum(
            lax.dot_general(y2d, w1.astype(jnp.float32), _CONTRACT_LAST,
                            preferred_element_type=jnp.float32), 0.0)
        s = jax.nn.sigmoid(
            lax.dot_general(h, w2.astype(jnp.float32), _CONTRACT_LAST,
                            preferred_element_type=jnp.float32))
    else:
        s = pl.pallas_call(
            _excite_kernel,
            out_shape=jax.ShapeDtypeStruct((B, C), jnp.float32),
            grid_spec=pltpu.PrefetchScalarGridSpec(
                num_scalar_prefetch=0,
                grid=(1,),
                in_specs=[
                    pl.BlockSpec((B, C), lambda i: (0, 0)),
                    pl.BlockSpec((Cr, C), lambda i: (0, 0)),
                    pl.BlockSpec((C, Cr), lambda i: (0, 0)),
                ],
                out_specs=pl.BlockSpec((B, C), lambda i: (0, 0)),
            ),
            compiler_params=pltpu.CompilerParams(
                dimension_semantics=("arbitrary",),
                vmem_limit_bytes=_vmem_limit(2 * excite_bytes)),
            cost_estimate=pl.CostEstimate(
                flops=4 * B * C * Cr, transcendentals=B * C,
                bytes_accessed=excite_bytes),
        )(y2d, w1, w2)

    # ---- pass 3: scale (lane-dense, mem-bound, both axes parallel) ----------
    s2d = s.reshape(R, 1)
    scale_vmem = _vmem_limit(4 * blk_x + 2 * t_rows * 4)

    out2d = pl.pallas_call(
        _scale_kernel,
        out_shape=jax.ShapeDtypeStruct((R, L_work), x.dtype),
        grid_spec=pltpu.PrefetchScalarGridSpec(
            num_scalar_prefetch=0,
            grid=(n_rows, n_len),
            in_specs=[
                pl.BlockSpec((t_rows, t_len), lambda r, l: (r, l)),
                pl.BlockSpec((t_rows, 1), lambda r, l: (r, 0)),
            ],
            out_specs=pl.BlockSpec((t_rows, t_len), lambda r, l: (r, l)),
        ),
        compiler_params=pltpu.CompilerParams(
            dimension_semantics=("parallel", "parallel"),
            vmem_limit_bytes=scale_vmem),
        cost_estimate=pl.CostEstimate(
            flops=R * L_work, transcendentals=0,
            bytes_accessed=2 * R * L_work * itemsize + R * 4),
    )(x2d, s2d)

    if L_work != L:
        out2d = out2d[:, :L]
    return out2d.reshape(B, C, L)


def se_layer_ref(x, w1, w2):
    """Pure-JAX reference matching the PyTorch module."""
    y = jnp.mean(x.astype(jnp.float32), axis=-1)                 # (B, C)
    h = jnp.maximum(y @ w1.astype(jnp.float32).T, 0.0)           # (B, C//r)
    s = jax.nn.sigmoid(h @ w2.astype(jnp.float32).T)             # (B, C)
    return (x * s[:, :, None].astype(x.dtype)).astype(x.dtype)


if __name__ == "__main__":
    key = jax.random.PRNGKey(0)
    kx, k1, k2, kx2, kx3 = jax.random.split(key, 5)

    # Primary small config (B, C, L) with C % reduction == 0.
    B, C, L, reduction = 2, 8, 256, 4
    Cr = C // reduction

    x = jax.random.normal(kx, (B, C, L), dtype=jnp.float32)
    w1 = jax.random.uniform(k1, (Cr, C), dtype=jnp.float32,
                            minval=-1.0, maxval=1.0) * (1.0 / (C ** 0.5))
    w2 = jax.random.uniform(k2, (C, Cr), dtype=jnp.float32,
                            minval=-1.0, maxval=1.0) * (1.0 / (Cr ** 0.5))

    out = jax.block_until_ready(se_layer(x, w1, w2))
    ref = se_layer_ref(x, w1, w2)
    assert out.shape == (B, C, L)
    assert jnp.allclose(out, ref, atol=1e-5, rtol=1e-5), "mismatch vs reference"

    # Multi-tile grids: exercises the L-axis reduction accumulator, row tiling
    # and both "parallel" axes, while staying small.
    B2, C2, L2 = 2, 64, 1024
    Cr2 = C2 // reduction
    x2 = jax.random.normal(kx2, (B2, C2, L2), dtype=jnp.float32)
    w1b = jax.random.uniform(k1, (Cr2, C2), dtype=jnp.float32,
                             minval=-1.0, maxval=1.0) * (1.0 / (C2 ** 0.5))
    w2b = jax.random.uniform(k2, (C2, Cr2), dtype=jnp.float32,
                             minval=-1.0, maxval=1.0) * (1.0 / (Cr2 ** 0.5))
    out2 = jax.block_until_ready(
        se_layer(x2, w1b, w2b, row_tile=32, len_tile=256))
    ref2 = se_layer_ref(x2, w1b, w2b)
    assert jnp.allclose(out2, ref2, atol=1e-5, rtol=1e-5), "tiled mismatch vs reference"

    # L not a multiple of 128: exercises the lane-dense padding path.
    B3, C3, L3 = 2, 8, 200
    x3 = jax.random.normal(kx3, (B3, C3, L3), dtype=jnp.float32)
    out3 = jax.block_until_ready(se_layer(x3, w1, w2))
    ref3 = se_layer_ref(x3, w1, w2)
    assert out3.shape == (B3, C3, L3)
    assert jnp.allclose(out3, ref3, atol=1e-5, rtol=1e-5), "padded-L mismatch vs reference"

    print("KERNEL_OK")
</pallas_src>

<mosaic_0001>
module attributes {stable_mosaic.version = 11 : i64} {
  func.func @_squeeze_kernel(%arg0: i32, %arg1: i32, %arg2: memref<8x256xf32, #tpu.memory_space<vmem>>, %arg3: memref<8x1xf32, #tpu.memory_space<vmem>>, %arg4: memref<8x128xf32, #tpu.memory_space<vmem>>) attributes {dimension_semantics = [#tpu.dimension_semantics<parallel>, #tpu.dimension_semantics<arbitrary>], iteration_bounds = array<i64: 2, 1>, scalar_prefetch = 0 : i64, scratch_operands = 1 : i64, tpu.core_type = #tpu.core_type<tc>, window_params = [{transform_indices = @transform_0, window_bounds = array<i64: 8, 256>}, {transform_indices = @transform_1, window_bounds = array<i64: 8, 1>}]} {
    %c0_i32 = arith.constant 0 : i32
    %0 = arith.cmpi eq, %arg1, %c0_i32 : i32
    %1 = arith.extui %0 : i1 to i32
    %c0_i32_0 = arith.constant 0 : i32
    %2 = arith.cmpi ne, %1, %c0_i32_0 : i32
    scf.if %2 {
      %cst = arith.constant 0.000000e+00 : f32
      %12 = vector.broadcast %cst : f32 to vector<8x128xf32>
      %c0_9 = arith.constant 0 : index
      %c0_10 = arith.constant 0 : index
      %13 = vector.load %arg4[%c0_9, %c0_10] : memref<8x128xf32, #tpu.memory_space<vmem>>, vector<8x128xf32>
      tpu.vector_store %arg4[%c0_9, %c0_10], %12 {strides = array<i32>} : memref<8x128xf32, #tpu.memory_space<vmem>>, vector<8x128xf32>,
    } else {
    }
    %c0 = arith.constant 0 : index
    %c0_1 = arith.constant 0 : index
    %3 = vector.load %arg2[%c0, %c0_1] : memref<8x256xf32, #tpu.memory_space<vmem>>, vector<8x128xf32>
    %c0_2 = arith.constant 0 : index
    %c128 = arith.constant 128 : index
    %4 = vector.load %arg2[%c0_2, %c128] : memref<8x256xf32, #tpu.memory_space<vmem>>, vector<8x128xf32>
    %5 = arith.addf %3, %4 : vector<8x128xf32>
    %c0_3 = arith.constant 0 : index
    %c0_4 = arith.constant 0 : index
    %6 = vector.load %arg4[%c0_3, %c0_4] : memref<8x128xf32, #tpu.memory_space<vmem>>, vector<8x128xf32>
    %7 = arith.addf %6, %5 : vector<8x128xf32>
    %c0_5 = arith.constant 0 : index
    %c0_6 = arith.constant 0 : index
    %8 = vector.load %arg4[%c0_5, %c0_6] : memref<8x128xf32, #tpu.memory_space<vmem>>, vector<8x128xf32>
    tpu.vector_store %arg4[%c0_5, %c0_6], %7 {strides = array<i32>} : memref<8x128xf32, #tpu.memory_space<vmem>>, vector<8x128xf32>,
    %c0_i32_7 = arith.constant 0 : i32
    %9 = arith.cmpi eq, %arg1, %c0_i32_7 : i32
    %10 = arith.extui %9 : i1 to i32
    %c0_i32_8 = arith.constant 0 : i32
    %11 = arith.cmpi ne, %10, %c0_i32_8 : i32
    scf.if %11 {
      %c0_9 = arith.constant 0 : index
      %c0_10 = arith.constant 0 : index
      %12 = vector.load %arg4[%c0_9, %c0_10] : memref<8x128xf32, #tpu.memory_space<vmem>>, vector<8x128xf32>
      %cst = arith.constant dense<0.000000e+00> : vector<8xf32>
      %13 = vector.multi_reduction <add>, %12, %cst [1] : vector<8x128xf32> to vector<8xf32>
      %14 = vector.shape_cast %13 : vector<8xf32> to vector<8x1xf32>
      %cst_11 = arith.constant 3.906250e-03 : f32
      %15 = vector.broadcast %cst_11 : f32 to vector<8x1xf32>
      %16 = arith.mulf %14, %15 : vector<8x1xf32>
      %c0_12 = arith.constant 0 : index
      %c0_13 = arith.constant 0 : index
      %17 = vector.load %arg3[%c0_12, %c0_13] : memref<8x1xf32, #tpu.memory_space<vmem>>, vector<8x1xf32>
      tpu.vector_store %arg3[%c0_12, %c0_13], %16 {strides = array<i32>} : memref<8x1xf32, #tpu.memory_space<vmem>>, vector<8x1xf32>,
    } else {
    }
    return
  }
  func.func @transform_0(%arg0: i32, %arg1: i32) -> (i32, i32) {
    %c0_i32 = arith.constant 0 : i32
    return %arg0, %arg1 : i32, i32
  }
  func.func @transform_1(%arg0: i32, %arg1: i32) -> (i32, i32) {
    %c0_i32 = arith.constant 0 : i32
    %c0_i32_0 = arith.constant 0 : i32
    return %arg0, %c0_i32 : i32, i32
  }
}

</mosaic_0001>

<bundles_post_ra>
// kernel: tpu_custom_call.1
= control target key start
LH: loop header
LB: loop body
LE: loop exit
PB: predicated region body
PF: predicated region fallthrough
CT: control target
= control target key end

     0   :  { %6 = vsyncpa [#allocation4], 0  ;;  %s532_s0 = inlined_call_operand.hbm [shape: f32[16,256], index: 0, kind: input, shape index: {}]   ;;  %s533_s1 = inlined_call_operand.vmem [shape: f32[16,1], index: 1, kind: output, shape index: {}]  }
   0x1   :  { %8 = vsyncpa [#allocation4 + $0x1], 0  ;;  %s407_s6 = smov 0   ;;  %s409_s7 = smov 0  }
   0x2   :  { %s411_s8 = smov 0   ;;  %s413_s9 = smov 0  }
   0x3   :  { %s415_s10 = smov 0   ;;  %s417_s11 = smov 0  }
   0x4 LB: > { %s246_s12 = sadd.s32 4294967295, %s394_s11   ;;  %s26_s13 = sadd.s32 1, %s390_s10  ;;  %s394_s11 = sphi %s417_s11, %s14_s11   ;;  %s390_s10 = sphi %s415_s10, %s543_s10   ;;  %s386_s9 = sphi %s413_s9, %s542_s9   ;;  %s382_s8 = sphi %s411_s8, %s541_s8   ;;  %s378_s7 = sphi %s409_s7, %s540_s7   ;;  %s374_s6 = sphi %s407_s6, %s539_s6  }
   0x5   : > { %p28_p0 = scmp.ge.s32.totalorder %s26_s13, 2  ;;  %s35_s14 = sadd.s32 1, %s382_s8 }
   0x6   : > { %p42_p1 = scmp.ne.s32.totalorder %s382_s8, %s378_s7  ;;  %p43_p2 = scmp.eq.s32.totalorder %s394_s11, 0 }
   0x7   : > { %s545_s13 = smov (%p28_p0, %s26_s13), 0  ;;  %p48_p4 = scmp.ne.s32.totalorder %s378_s7, %s374_s6 }
   0x8   : > { %p443_p3 = por %p43_p2, %p42_p1  ;;  %s30_s16 = ssub.s32 %s390_s10, %s545_s13 }
   0x9   : > { %p49_p5 = scmp.eq.s32.totalorder %s246_s12, 0  ;;  %p33_p6 = scmp.eq.s32.totalorder %s30_s16, 0 }
   0xa   : > { %p265_p8 = scmp.lt.s32.totalorder %s394_s11, 2  ;;  %s98_s19 = sand.u32 1, %s382_s8  }
   0xb   : > { %p450_p7 = por %p49_p5, %p48_p4  ;;  %s258_s20 = sshll.u32 %s390_s10, 8 }
   0xc   : > { %s456_s18 = scalar_select %p33_p6, %s382_s8, %s35_s14  }
   0xd   : > { %s250_s21 = sshll.u32 %s98_s19, 4  ;;  %s463_s24 = scalar_lea.hbm %s532_s0, %s258_s20 }
   0xe   : > { %s102_s25 = scalar_lea.vmem [#allocation3], %s250_s21  ;;  %p467_p9 = pnand %p265_p8, %p443_p3 }
   0xf   : > { %s112_s26 = sshll.u32 %s102_s25, 4  ;;  %s99_s28 = scalar_lea.sflag [#allocation4], %s98_s19  ;;  %s471_s26 = int_to_ptr.vmem [resolvable:$true] %s112_s26 }
  0x10   : > { %s314_s29 = scalar_lea.hbm %s463_s24, 256  ;;  %p316_p13 = pneg %p467_p9 }
  0x11   : > { %p315_p12 = scmp.ne.s32.totalorder %s463_s24, %s314_s29  ;;  %s319_s3 = scalar_lea.hbm %s532_s0, 512 }
  0x12   : > { %p320_p2 = scmp.lt.u32.totalorder %s463_s24, %s532_s0  ;;  %p321_p3 = scmp.lt.u32.totalorder %s319_s3, %s314_s29 }
  0x13   : > { %p317_p0 = pnand %p316_p13, %p315_p12  ;;  %p323_p5 = scmp.lt.u32.totalorder %s314_s29, %s463_s24 }
  0x14   : > { %p322_p4 = por %p321_p3, %p320_p2 }
  0x15   : > { %p318_p1 = pneg %p317_p0 }
  0x16   : > { %p324_p6 = por %p323_p5, %p322_p4 }
  0x18   : > { %p325_p8 = pnand %p324_p6, %p318_p1 }
  0x1a   : > { %328 = shalt.err (!%p325_p8)
}
  0x1b   : > { %s329_s6 = scalar_lea.vmem %s471_s26, 256  ;;  %s396_s12 = smov [#allocation3]  }
  0x1c   : > { %p330_p12 = scmp.ne.s32.totalorder %s471_s26, %s329_s6  ;;  %s334_s14 = sshll.u32 %s396_s12, 4  ;;  %s335_s14 = int_to_ptr.vmem [resolvable:$false] %s334_s14 }
  0x1d   : > { %s336_s15 = scalar_lea.vmem %s335_s14, 512  ;;  %p337_p11 = scmp.lt.s32.totalorder %s471_s26, %s335_s14 }
  0x1e   : > { %p332_p0 = pnand %p330_p12, %p316_p13  ;;  %p338_p2 = scmp.lt.s32.totalorder %s336_s15, %s329_s6 }
  0x20   : > { %p333_p10 = pneg %p332_p0  ;;  %p339_p3 = por %p338_p2, %p337_p11 }
  0x22   : > { %p340_p4 = pnand %p339_p3, %p333_p10 }
  0x24   : > { %343 = shalt.err (!%p340_p4)
}
  0x25   : > { %264 = dma.hbm_to_vmem [thread:$0]  (!%p467_p9), %s463_s24, 256, %s471_s26, %s99_s28  }
  0x26   : > { %p537_p1 = scmp.lt.s32.totalorder %s394_s11, 3  ;;  %p538_p5 = scmp.ge.s32.totalorder %s394_s11, 1 }
  0x28   : > { %p118_p13 = pnand %p538_p5, %p537_p1 }
  0x29   : > { %s123_s16 = sand.u32 (!%p118_p13), 1, %s378_s7  }
  0x2a   : > { %121 = sbr.rel (%p118_p13) target bundleno = 198 (0xc6), region = 24  ;;  %s254_s19 = sshll.u32 (!%p118_p13), %s123_s16, 4 }
  0x2b   : > { %s124_s20 = scalar_lea.sflag (!%p118_p13), [#allocation4], %s123_s16  ;;  %s127_s21 = scalar_lea.vmem (!%p118_p13), [#allocation3], %s254_s19 }
  0x31   : > { %369 = dma.done.wait (%p450_p7), %s124_s20, 256  }
  0x32   : > { %371 = vsyncadd (%p450_p7), %s124_s20, 4294967040  ;;  %v155_v0 = vld [vmem:[%s127_s21] sm:$0xff]  ;;  %v156_v1 = vld [vmem:[%s127_s21 + $0x8] sm:$0xff]  ;;  %p146_p9 = scmp.lt.s32.totalorder %s386_s9, 1  ;;  %vm168_vm0 = vcmask 7168  }
  0x33   : > { %v157_v2 = vadd.f32 %v156_v1, %v155_v0 }
  0x34   : > { %s547_s9 = smov (!%p146_p9, %s386_s9), 1 }
  0x35   : > { %165 = vadd.xlane.f32.xlu0 %v157_v2  ;;  %s255_s22 = sshll.u32 %s547_s9, 3 }
  0x36   : > { %s149_s25 = scalar_lea.vmem %s533_s1, %s255_s22 }
  0xc2   : > { %v166_v3 = vpop.xlane.xlu0 %165 }
  0xc3   : > { %v167_v4 = vmul.f32 0.00390625, %v166_v3 }
  0xc5   : > { %169 = vst.msk [vmem:[%s149_s25] sm:$0xff] %vm168_vm0, %v167_v4 }
  0xc6 PF: > { %s14_s11 = sadd.s32 1, %s394_s11   ;;  %s539_s6 = smov %s378_s7 }
  0xc7   : > { %p11_p7 = scmp.ge.s32.totalorder %s14_s11, 4   ;;  %s540_s7 = smov %s382_s8 }
  0xc8   : > { %s541_s8 = smov %s456_s18  ;;  %s542_s9 = smov %s390_s10 }
  0xc9   : > { %s543_s10 = smov %s545_s13  ;;  %13 = sbr.rel (!%p11_p7) target bundleno = 4 (0x4), region = 72 }
  0xd0   :  { %189 = vsyncpa [#allocation4], 1 }
  0xd1   :  { %191 = vsyncpa [#allocation4 + $0x1], 1 }

</bundles_post_ra>
